<compile_context>
chip_gen: v7x
topology: tpu7x:2x2x1
jax: 0.10.0
libtpu: 0.0.40
codegen_flags: <defaults>
</compile_context>

<pallas_src>
import jax
import jax.numpy as jnp
from jax.experimental import pallas as pl
from jax.experimental.pallas import tpu as pltpu

# ---- problem configuration (small, deterministic) ----
B = 2          # batch
IN_C = 4       # input channels
OUT_C = 8      # output channels (!= IN_C -> residual 1x1 conv is present)
K = 3          # kernel size
DIL = 2        # dilation
L = 16         # sequence length
PAD = (K - 1) * DIL          # causal padding (chomped off the right in torch)
NEG_SLOPE = 0.01             # torch.nn.LeakyReLU default
N = B * L                    # lanes after folding batch into the time axis


def causal_block_kernel(x_ref, wc1_ref, bc1_ref, w2_ref, b2_ref, o_ref):
    """Whole problem in one invocation.

    x_ref  : (IN_C, B*L)        input, batch folded into lanes
    wc1_ref: (2*OUT_C, K*IN_C)  [stacked conv1 taps ; residual 1x1 in last-tap cols]
    bc1_ref: (2*OUT_C, 1)       [b1 ; bres]
    w2_ref : (OUT_C, K*OUT_C)   stacked conv2 taps
    b2_ref : (OUT_C, 1)
    o_ref  : (OUT_C, B*L)
    """
    x = x_ref[...]

    # local time index within each length-L batch segment
    t_local = jax.lax.broadcasted_iota(jnp.int32, (1, N), 1) % L

    def shifted(v, s):
        # out[:, t] = v[:, t - s] when (t mod L) >= s else 0  (causal, per segment;
        # the mask also kills values that leak across the batch seam).
        if s == 0:
            return v
        z = jnp.zeros((v.shape[0], s), v.dtype)
        sh = jnp.concatenate([z, v[:, : N - s]], axis=-1)
        return jnp.where(t_local >= s, sh, 0.0)

    def im2col(v):
        # rows [j*C:(j+1)*C] hold v shifted by (K-1-j)*DIL  -> (K*C, B*L)
        return jnp.concatenate(
            [shifted(v, (K - 1 - j) * DIL) for j in range(K)], axis=0)

    def lrelu(h):
        return jnp.where(h >= 0, h, NEG_SLOPE * h)

    # ---- conv1 (+ fused residual 1x1): one MXU matmul ----
    y1 = jnp.dot(wc1_ref[...], im2col(x),
                 preferred_element_type=jnp.float32) + bc1_ref[...]
    h1 = lrelu(y1[:OUT_C])          # conv1 output (post LeakyReLU)
    res = y1[OUT_C:]                # residual path (1x1 conv + bias)

    # ---- conv2: one MXU matmul ----
    h2 = jnp.dot(w2_ref[...], im2col(h1),
                 preferred_element_type=jnp.float32) + b2_ref[...]
    h2 = lrelu(h2)

    o_ref[...] = h2 + res


def causal_convolution_block(x, w1, b1, w2, b2, wres, bres):
    """x: (B, IN_C, L) float32 -> (B, OUT_C, L) float32."""
    # Fold batch into the lane (time) axis: (IN_C, B*L).
    x2d = jnp.transpose(x, (1, 0, 2)).reshape(IN_C, N)

    # im2col weight stacking: columns ordered (tap0 chans, tap1 chans, ...).
    w1_s = jnp.transpose(w1, (0, 2, 1)).reshape(OUT_C, K * IN_C)
    w2_s = jnp.transpose(w2, (0, 2, 1)).reshape(OUT_C, K * OUT_C)
    # Residual 1x1 conv fused as extra output rows of the conv1 matmul; it only
    # reads the unshifted (last) tap block of the im2col operand.
    wres_s = jnp.concatenate(
        [jnp.zeros((OUT_C, (K - 1) * IN_C), jnp.float32),
         wres.reshape(OUT_C, IN_C)], axis=1)
    wc1 = jnp.concatenate([w1_s, wres_s], axis=0)            # (2*OUT_C, K*IN_C)
    bc1 = jnp.concatenate([b1, bres]).reshape(2 * OUT_C, 1)
    b2_c = b2.reshape(OUT_C, 1)

    grid_spec = pltpu.PrefetchScalarGridSpec(
        num_scalar_prefetch=0,
        grid=(1,),  # single invocation: whole (tiny) problem fits in VMEM
        in_specs=[
            pl.BlockSpec((IN_C, N), lambda i: (0, 0)),
            pl.BlockSpec((2 * OUT_C, K * IN_C), lambda i: (0, 0)),
            pl.BlockSpec((2 * OUT_C, 1), lambda i: (0, 0)),
            pl.BlockSpec((OUT_C, K * OUT_C), lambda i: (0, 0)),
            pl.BlockSpec((OUT_C, 1), lambda i: (0, 0)),
        ],
        out_specs=pl.BlockSpec((OUT_C, N), lambda i: (0, 0)),
    )

    out2d = pl.pallas_call(
        causal_block_kernel,
        out_shape=jax.ShapeDtypeStruct((OUT_C, N), jnp.float32),
        grid_spec=grid_spec,
        compiler_params=pltpu.CompilerParams(
            dimension_semantics=("arbitrary",)),
    )(x2d, wc1, bc1, w2_s, b2_c)

    return jnp.transpose(out2d.reshape(OUT_C, B, L), (1, 0, 2))


def weight_norm(v, g):
    """torch.nn.utils.weight_norm with dim=0: w = g * v / ||v|| (norm per out-channel)."""
    norm = jnp.sqrt(jnp.sum(v * v, axis=(1, 2), keepdims=True))
    return g.reshape(-1, 1, 1) * v / norm


def reference_forward(x, w1, b1, w2, b2, wres, bres):
    """Pure-JAX reference mirroring the PyTorch module (for validation)."""
    def conv1d(x, w, b, dilation, padding):
        out = jax.lax.conv_general_dilated(
            x, w, window_strides=(1,), padding=[(padding, padding)],
            rhs_dilation=(dilation,), dimension_numbers=("NCH", "OIH", "NCH"))
        return out + b[None, :, None]

    def lrelu(x):
        return jnp.where(x >= 0, x, NEG_SLOPE * x)

    h = conv1d(x, w1, b1, DIL, PAD)[:, :, :-PAD]   # conv1 + chomp
    h = lrelu(h)
    h = conv1d(h, w2, b2, DIL, PAD)[:, :, :-PAD]   # conv2 + chomp
    h = lrelu(h)
    res = conv1d(x, wres, bres, 1, 0)              # 1x1 up/down-sample
    return h + res


if __name__ == "__main__":
    key = jax.random.PRNGKey(0)
    keys = jax.random.split(key, 8)

    x = jax.random.normal(keys[0], (B, IN_C, L), dtype=jnp.float32)

    # Deterministic parameter init (weight_norm reparam: v and g).
    v1 = jax.random.normal(keys[1], (OUT_C, IN_C, K), dtype=jnp.float32) * 0.3
    g1 = 1.0 + 0.1 * jax.random.normal(keys[2], (OUT_C,), dtype=jnp.float32)
    b1 = 0.1 * jax.random.normal(keys[3], (OUT_C,), dtype=jnp.float32)
    v2 = jax.random.normal(keys[4], (OUT_C, OUT_C, K), dtype=jnp.float32) * 0.3
    g2 = 1.0 + 0.1 * jax.random.normal(keys[5], (OUT_C,), dtype=jnp.float32)
    b2 = 0.1 * jax.random.normal(keys[6], (OUT_C,), dtype=jnp.float32)
    wres = jax.random.normal(keys[7], (OUT_C, IN_C, 1), dtype=jnp.float32) * 0.3
    bres = jnp.linspace(-0.1, 0.1, OUT_C, dtype=jnp.float32)

    w1 = weight_norm(v1, g1)   # effective conv1 weight (OUT_C, IN_C, K)
    w2 = weight_norm(v2, g2)   # effective conv2 weight (OUT_C, OUT_C, K)

    out = causal_convolution_block(x, w1, b1, w2, b2, wres, bres)
    out = jax.block_until_ready(out)

    ref = reference_forward(x, w1, b1, w2, b2, wres, bres)
    assert out.shape == (B, OUT_C, L)
    assert jnp.allclose(out, ref, atol=1e-4, rtol=1e-4), "mismatch vs JAX reference"

    print("KERNEL_OK")
</pallas_src>

<mosaic_0001>
module attributes {stable_mosaic.version = 11 : i64} {
  func.func @causal_block_kernel(%arg0: i32, %arg1: memref<4x32xf32, #tpu.memory_space<vmem>>, %arg2: memref<16x12xf32, #tpu.memory_space<vmem>>, %arg3: memref<16x1xf32, #tpu.memory_space<vmem>>, %arg4: memref<8x24xf32, #tpu.memory_space<vmem>>, %arg5: memref<8x1xf32, #tpu.memory_space<vmem>>, %arg6: memref<8x32xf32, #tpu.memory_space<vmem>>) attributes {dimension_semantics = [#tpu.dimension_semantics<arbitrary>], iteration_bounds = array<i64: 1>, scalar_prefetch = 0 : i64, scratch_operands = 0 : i64, tpu.core_type = #tpu.core_type<tc>, window_params = [{pipeline_mode = #tpu.pipeline_mode<synchronous>, transform_indices = @transform_0, window_bounds = array<i64: 4, 32>}, {pipeline_mode = #tpu.pipeline_mode<synchronous>, transform_indices = @transform_1, window_bounds = array<i64: 16, 12>}, {pipeline_mode = #tpu.pipeline_mode<synchronous>, transform_indices = @transform_2, window_bounds = array<i64: 16, 1>}, {pipeline_mode = #tpu.pipeline_mode<synchronous>, transform_indices = @transform_3, window_bounds = array<i64: 8, 24>}, {pipeline_mode = #tpu.pipeline_mode<synchronous>, transform_indices = @transform_4, window_bounds = array<i64: 8, 1>}, {pipeline_mode = #tpu.pipeline_mode<synchronous>, transform_indices = @transform_5, window_bounds = array<i64: 8, 32>}]} {
    %c0 = arith.constant 0 : index
    %c0_0 = arith.constant 0 : index
    %0 = vector.load %arg1[%c0, %c0_0] : memref<4x32xf32, #tpu.memory_space<vmem>>, vector<4x32xf32>
    %1 = tpu.iota {dimensions = array<i32: 1>} : vector<1x32xi32>
    %c16_i32 = arith.constant 16 : i32
    %c0_i32 = arith.constant 0 : i32
    %2 = arith.cmpi eq, %c16_i32, %c0_i32 : i32
    %c1_i32 = arith.constant 1 : i32
    %3 = arith.select %2, %c1_i32, %c16_i32 : i32
    %4 = vector.broadcast %3 : i32 to vector<1x32xi32>
    %5 = arith.remsi %1, %4 : vector<1x32xi32>
    %c0_i32_1 = arith.constant 0 : i32
    %6 = vector.broadcast %c0_i32_1 : i32 to vector<1x32xi32>
    %7 = arith.cmpi ne, %5, %6 : vector<1x32xi32>
    %c0_i32_2 = arith.constant 0 : i32
    %8 = vector.broadcast %c0_i32_2 : i32 to vector<1x32xi32>
    %9 = arith.cmpi slt, %5, %8 : vector<1x32xi32>
    %c0_i32_3 = arith.constant 0 : i32
    %10 = arith.cmpi slt, %3, %c0_i32_3 : i32
    %11 = vector.broadcast %10 : i1 to vector<1x32xi1>
    %12 = vector.broadcast %11 : vector<1x32xi1> to vector<1x32xi1>
    %13 = arith.xori %9, %12 : vector<1x32xi1>
    %14 = arith.andi %13, %7 : vector<1x32xi1>
    %15 = vector.broadcast %3 : i32 to vector<1x32xi32>
    %16 = arith.addi %5, %15 : vector<1x32xi32>
    %17 = arith.select %14, %16, %5 : vector<1x32xi1>, vector<1x32xi32>
    %c0_4 = arith.constant 0 : index
    %c0_5 = arith.constant 0 : index
    %18 = vector.load %arg2[%c0_4, %c0_5] : memref<16x12xf32, #tpu.memory_space<vmem>>, vector<16x12xf32>
    %cst = arith.constant 0.000000e+00 : f32
    %19 = vector.broadcast %cst : f32 to vector<4x4xf32>
    %20 = vector.extract_strided_slice %0 {offsets = [0, 0], sizes = [4, 28], strides = [1, 1]} : vector<4x32xf32> to vector<4x28xf32>
    %21 = tpu.concatenate %19, %20 in 1 : vector<4x4xf32>, vector<4x28xf32> -> vector<4x32xf32>
    %c4_i32 = arith.constant 4 : i32
    %22 = vector.broadcast %c4_i32 : i32 to vector<1x32xi32>
    %23 = arith.cmpi sge, %17, %22 : vector<1x32xi32>
    %cst_6 = arith.constant 0.000000e+00 : f32
    %24 = vector.shape_cast %23 : vector<1x32xi1> to vector<1x32xi1>
    %25 = vector.broadcast %24 : vector<1x32xi1> to vector<4x32xi1>
    %26 = vector.broadcast %cst_6 : f32 to vector<4x32xf32>
    %27 = arith.select %25, %21, %26 : vector<4x32xi1>, vector<4x32xf32>
    %cst_7 = arith.constant 0.000000e+00 : f32
    %28 = vector.broadcast %cst_7 : f32 to vector<4x2xf32>
    %29 = vector.extract_strided_slice %0 {offsets = [0, 0], sizes = [4, 30], strides = [1, 1]} : vector<4x32xf32> to vector<4x30xf32>
    %30 = tpu.concatenate %28, %29 in 1 : vector<4x2xf32>, vector<4x30xf32> -> vector<4x32xf32>
    %c2_i32 = arith.constant 2 : i32
    %31 = vector.broadcast %c2_i32 : i32 to vector<1x32xi32>
    %32 = arith.cmpi sge, %17, %31 : vector<1x32xi32>
    %cst_8 = arith.constant 0.000000e+00 : f32
    %33 = vector.shape_cast %32 : vector<1x32xi1> to vector<1x32xi1>
    %34 = vector.broadcast %33 : vector<1x32xi1> to vector<4x32xi1>
    %35 = vector.broadcast %cst_8 : f32 to vector<4x32xf32>
    %36 = arith.select %34, %30, %35 : vector<4x32xi1>, vector<4x32xf32>
    %37 = tpu.concatenate %27, %36, %0 in 0 : vector<4x32xf32>, vector<4x32xf32>, vector<4x32xf32> -> vector<12x32xf32>
    %cst_9 = arith.constant dense<0.000000e+00> : vector<16x32xf32>
    %38 = tpu.matmul %18, %37, %cst_9 {dimension_numbers = #tpu.dot_dimension_numbers<[1], [0], [0], [1], [0, 0, 1, 1], [], []>} : vector<16x12xf32>, vector<12x32xf32>, vector<16x32xf32> -> vector<16x32xf32>
    %c0_10 = arith.constant 0 : index
    %c0_11 = arith.constant 0 : index
    %39 = vector.load %arg3[%c0_10, %c0_11] : memref<16x1xf32, #tpu.memory_space<vmem>>, vector<16x1xf32>
    %40 = vector.broadcast %39 : vector<16x1xf32> to vector<16x32xf32>
    %41 = arith.addf %38, %40 : vector<16x32xf32>
    %42 = vector.extract_strided_slice %41 {offsets = [0, 0], sizes = [8, 32], strides = [1, 1]} : vector<16x32xf32> to vector<8x32xf32>
    %cst_12 = arith.constant 0.000000e+00 : f32
    %43 = vector.broadcast %cst_12 : f32 to vector<8x32xf32>
    %44 = arith.cmpf oge, %42, %43 : vector<8x32xf32>
    %cst_13 = arith.constant 0.00999999977 : f32
    %45 = vector.broadcast %cst_13 : f32 to vector<8x32xf32>
    %46 = arith.mulf %45, %42 : vector<8x32xf32>
    %47 = arith.select %44, %42, %46 : vector<8x32xi1>, vector<8x32xf32>
    %48 = vector.extract_strided_slice %41 {offsets = [8, 0], sizes = [8, 32], strides = [1, 1]} : vector<16x32xf32> to vector<8x32xf32>
    %c0_14 = arith.constant 0 : index
    %c0_15 = arith.constant 0 : index
    %49 = vector.load %arg4[%c0_14, %c0_15] : memref<8x24xf32, #tpu.memory_space<vmem>>, vector<8x24xf32>
    %cst_16 = arith.constant 0.000000e+00 : f32
    %50 = vector.broadcast %cst_16 : f32 to vector<8x4xf32>
    %51 = vector.extract_strided_slice %47 {offsets = [0, 0], sizes = [8, 28], strides = [1, 1]} : vector<8x32xf32> to vector<8x28xf32>
    %52 = tpu.concatenate %50, %51 in 1 : vector<8x4xf32>, vector<8x28xf32> -> vector<8x32xf32>
    %c4_i32_17 = arith.constant 4 : i32
    %53 = vector.broadcast %c4_i32_17 : i32 to vector<1x32xi32>
    %54 = arith.cmpi sge, %17, %53 : vector<1x32xi32>
    %cst_18 = arith.constant 0.000000e+00 : f32
    %55 = vector.shape_cast %54 : vector<1x32xi1> to vector<1x32xi1>
    %56 = vector.broadcast %55 : vector<1x32xi1> to vector<8x32xi1>
    %57 = vector.broadcast %cst_18 : f32 to vector<8x32xf32>
    %58 = arith.select %56, %52, %57 : vector<8x32xi1>, vector<8x32xf32>
    %cst_19 = arith.constant 0.000000e+00 : f32
    %59 = vector.broadcast %cst_19 : f32 to vector<8x2xf32>
    %60 = vector.extract_strided_slice %47 {offsets = [0, 0], sizes = [8, 30], strides = [1, 1]} : vector<8x32xf32> to vector<8x30xf32>
    %61 = tpu.concatenate %59, %60 in 1 : vector<8x2xf32>, vector<8x30xf32> -> vector<8x32xf32>
    %c2_i32_20 = arith.constant 2 : i32
    %62 = vector.broadcast %c2_i32_20 : i32 to vector<1x32xi32>
    %63 = arith.cmpi sge, %17, %62 : vector<1x32xi32>
    %cst_21 = arith.constant 0.000000e+00 : f32
    %64 = vector.shape_cast %63 : vector<1x32xi1> to vector<1x32xi1>
    %65 = vector.broadcast %64 : vector<1x32xi1> to vector<8x32xi1>
    %66 = vector.broadcast %cst_21 : f32 to vector<8x32xf32>
    %67 = arith.select %65, %61, %66 : vector<8x32xi1>, vector<8x32xf32>
    %68 = tpu.concatenate %58, %67, %47 in 0 : vector<8x32xf32>, vector<8x32xf32>, vector<8x32xf32> -> vector<24x32xf32>
    %cst_22 = arith.constant dense<0.000000e+00> : vector<8x32xf32>
    %69 = tpu.matmul %49, %68, %cst_22 {dimension_numbers = #tpu.dot_dimension_numbers<[1], [0], [0], [1], [0, 0, 1, 1], [], []>} : vector<8x24xf32>, vector<24x32xf32>, vector<8x32xf32> -> vector<8x32xf32>
    %c0_23 = arith.constant 0 : index
    %c0_24 = arith.constant 0 : index
    %70 = vector.load %arg5[%c0_23, %c0_24] : memref<8x1xf32, #tpu.memory_space<vmem>>, vector<8x1xf32>
    %71 = vector.broadcast %70 : vector<8x1xf32> to vector<8x32xf32>
    %72 = arith.addf %69, %71 : vector<8x32xf32>
    %cst_25 = arith.constant 0.000000e+00 : f32
    %73 = vector.broadcast %cst_25 : f32 to vector<8x32xf32>
    %74 = arith.cmpf oge, %72, %73 : vector<8x32xf32>
    %cst_26 = arith.constant 0.00999999977 : f32
    %75 = vector.broadcast %cst_26 : f32 to vector<8x32xf32>
    %76 = arith.mulf %75, %72 : vector<8x32xf32>
    %77 = arith.select %74, %72, %76 : vector<8x32xi1>, vector<8x32xf32>
    %78 = arith.addf %77, %48 : vector<8x32xf32>
    %c0_27 = arith.constant 0 : index
    %c0_28 = arith.constant 0 : index
    %79 = vector.load %arg6[%c0_27, %c0_28] : memref<8x32xf32, #tpu.memory_space<vmem>>, vector<8x32xf32>
    tpu.vector_store %arg6[%c0_27, %c0_28], %78 {strides = array<i32>} : memref<8x32xf32, #tpu.memory_space<vmem>>, vector<8x32xf32>,
    return
  }
  func.func @transform_0(%arg0: i32) -> (i32, i32) {
    %c0_i32 = arith.constant 0 : i32
    %c0_i32_0 = arith.constant 0 : i32
    %c0_i32_1 = arith.constant 0 : i32
    return %c0_i32, %c0_i32_0 : i32, i32
  }
  func.func @transform_1(%arg0: i32) -> (i32, i32) {
    %c0_i32 = arith.constant 0 : i32
    %c0_i32_0 = arith.constant 0 : i32
    %c0_i32_1 = arith.constant 0 : i32
    return %c0_i32, %c0_i32_0 : i32, i32
  }
  func.func @transform_2(%arg0: i32) -> (i32, i32) {
    %c0_i32 = arith.constant 0 : i32
    %c0_i32_0 = arith.constant 0 : i32
    %c0_i32_1 = arith.constant 0 : i32
    return %c0_i32, %c0_i32_0 : i32, i32
  }
  func.func @transform_3(%arg0: i32) -> (i32, i32) {
    %c0_i32 = arith.constant 0 : i32
    %c0_i32_0 = arith.constant 0 : i32
    %c0_i32_1 = arith.constant 0 : i32
    return %c0_i32, %c0_i32_0 : i32, i32
  }
  func.func @transform_4(%arg0: i32) -> (i32, i32) {
    %c0_i32 = arith.constant 0 : i32
    %c0_i32_0 = arith.constant 0 : i32
    %c0_i32_1 = arith.constant 0 : i32
    return %c0_i32, %c0_i32_0 : i32, i32
  }
  func.func @transform_5(%arg0: i32) -> (i32, i32) {
    %c0_i32 = arith.constant 0 : i32
    %c0_i32_0 = arith.constant 0 : i32
    %c0_i32_1 = arith.constant 0 : i32
    return %c0_i32, %c0_i32_0 : i32, i32
  }
}

</mosaic_0001>

<bundles_post_ra>
// kernel: tpu_custom_call.1
= control target key start
LH: loop header
LB: loop body
LE: loop exit
PB: predicated region body
PF: predicated region fallthrough
CT: control target
= control target key end

     0   :  { %s347_s20 = smov 2   ;;  %vm74_vm0 = vcmask 97280   ;;  %v348_v2 = vmov 0   ;;  %s444_s0 = inlined_call_operand.vmem [shape: f32[4,32], index: 0, kind: input, shape index: {}]   ;;  %s445_s1 = inlined_call_operand.vmem [shape: f32[16,12], index: 1, kind: input, shape index: {}]   ;;  %s446_s2 = inlined_call_operand.vmem [shape: f32[16,1], index: 2, kind: input, shape index: {}]   ;;  %s447_s3 = inlined_call_operand.vmem [shape: f32[8,24], index: 3, kind: input, shape index: {}]   ;;  %s448_s4 = inlined_call_operand.vmem [shape: f32[8,1], index: 4, kind: input, shape index: {}]   ;;  %s449_s5 = inlined_call_operand.hbm [shape: f32[8,32], index: 5, kind: output, shape index: {}]  }
   0x1   :  { %v21_v0 = vld [vmem:[%s444_s0] sm:$0xf]  ;;  %321 = vset.pattern.permute.xlu1 %v348_v2  ;;  %322 = vset.pattern.permute.xlu0 %v348_v2 }
   0x2   :  { %48 = vrot.lane.b32.xlu0 %v21_v0, %s347_s20  ;;  %v36_v1 = vld [vmem:[%s445_s1] sm:$0xff] }
   0x3   :  { %291 = vmatprep.mubr.msk.f32.mxu0 %vm74_vm0, %v36_v1  ;;  %v62_v3 = vld [vmem:[%s446_s2] sm:$0xff] }
   0x4   :  { %66 = vperm.xlu1 %321, %v62_v3  }
   0x5   :  { %10 = vsyncpa [#allocation3], 0  ;;  %s349_s0 = smov 4   ;;  %v22_v4 = vlaneseq  ;;  %vm51_vm1 = vcmask 15360   ;;  %vm42_vm3 = vcmask 31744   ;;  %vm60_vm5 = vcmask 1043456  }
   0x6   :  { %39 = vrot.lane.b32.xlu0 %v21_v0, %s349_s0  ;;  %vm350_vm6 = vmmov 1   ;;  %v37_v18 = vld [vmem:[%s445_s1 + $0x8] sm:$0xff]  ;;  %v351_v19 = vmov 0.0|0.0   ;;  %vm352_vm8 = vmmov 0   ;;  %v353_v23 = vmov 0.0   ;;  %v173_v28 = vld [vmem:[%s448_s4] sm:$0xff] }
   0x7   :  { %v23_v5 = vand.u32 127, %v22_v4  ;;  %vm304_vm7 = vmpackc.low %vm60_vm5, %vm350_vm6  ;;  %309 = vmatprep.subr.bf16.mxu1 %v351_v19  ;;  %300 = vmatprep.mubr.msk.f32.mxu1 %vm352_vm8, %v353_v23  ;;  %v63_v27 = vld [vmem:[%s446_s2 + $0x8] sm:$0xff]  ;;  %v161_v34 = vld [vmem:[%s447_s3] sm:$0xff]  ;;  %vm179_vm11 = vcmask 195584   ;;  %s354_s4 = smov [#allocation2]   ;;  %vm257_vm13 = vcmask 261120  }
   0x8   :  { %s265_s6 = sshll.u32 %s354_s4, 4  ;;  %s266_s6 = int_to_ptr.vmem [resolvable:$true] %s265_s6 }
   0x9   :  { %v28_v6 = vand.u32 15, %v23_v5  ;;  %s323_s7 = scalar_lea.vmem %s266_s6, 128  ;;  %p328_p1 = scmp.lt.s32.totalorder %s266_s6, %s266_s6 }
   0xa   :  { %p324_p0 = scmp.ne.s32.totalorder %s266_s6, %s323_s7  ;;  %p329_p2 = scmp.lt.s32.totalorder %s323_s7, %s323_s7 }
   0xb   :  { %vm397_vm2 = vcmp.ge.s32.totalorder %v28_v6, 2  ;;  %vm404_vm4 = vcmp.ge.s32.totalorder %v28_v6, 4 }
   0xc   :  { %vm311_vm10 = vmpackc.low %vm397_vm2, %vm404_vm4  ;;  %p330_p3 = por %p329_p2, %p328_p1 }
   0xe   :  { %p331_p4 = pnand %p330_p3, %p324_p0 }
  0x74   :  { %v49_v8 = vpop.permute.xlu0 %48 }
  0x75   :  { %v52_v9 = vsel %vm51_vm1, 0.0, %v49_v8 }
  0x76   :  { %v56_v10 = vsel %vm397_vm2, %v52_v9, 0.0 }
  0x77   :  { %v58_v13 = vrot.slane %v56_v10, 4 }
  0x78   :  { %v40_v12 = vpop.permute.xlu0 %39 }
  0x79   :  { %v43_v14 = vsel %vm42_vm3, 0.0, %v40_v12 }
  0x7a   :  { %v47_v15 = vsel %vm404_vm4, %v43_v14, 0.0 }
  0x7b   :  { %v61_v16 = vsel %vm60_vm5, %v47_v15, %v58_v13 }
  0x7c   :  { %v303_v17 = vpack.c.bf16 %v21_v0, %v61_v16 }
  0x7e   :  { %305 = vmatprep.subr.msk.bf16.mxu0 %vm304_vm7, %v303_v17 }
  0x7f   :  { %308 = vmatpush3.bf16.msk.msra.mxu0 %vm304_vm7, %v303_v17 }
  0x82   :  { %292 = vmatmul.mubr.msk.f32.vlgmr.msra.gmra.mrb[0].mxu0 %vm74_vm0, %v37_v18 }
  0x83   :  { %v67_v20 = vpop.permute.xlu1 %66 }
 0x155   :  { %v293_v21 = vpop.f32.mrb[0].mxu0 }
 0x156   :  { %v149_v22 = vpop.f32.mrb[1].mxu0 }
 0x157   :  { %v150_v24 = vadd.f32 %v149_v22, %v67_v20 }
 0x159   :  { %v159_v25 = vmul.f32 0.01, %v150_v24  ;;  %vm158_vm9 = vcmp.ge.f32.partialorder %v150_v24, 0.0 }
 0x15b   :  { %v160_v26 = vsel %vm158_vm9, %v150_v24, %v159_v25 }
 0x15c   :  { %168 = vrot.lane.b32.xlu0 %v160_v26, %s347_s20  ;;  %163 = vrot.lane.b32.xlu1 %v160_v26, %s349_s0 }
 0x160   :  { %71 = vperm.xlu0 %322, %v63_v27   ;;  %176 = vperm.xlu1 %321, %v173_v28  }
 0x1ce   :  { %v169_v29 = vpop.permute.xlu0 %168  ;;  %v164_v30 = vpop.permute.xlu1 %163 }
 0x1cf   :  { %v171_v31 = vsel %vm51_vm1, 0.0, %v169_v29  ;;  %v166_v32 = vsel %vm42_vm3, 0.0, %v164_v30 }
 0x1d0   :  { %v310_v33 = vpack.c.bf16 %v171_v31, %v166_v32 }
 0x1d2   :  { %312 = vmatpush3.bf16.msk.msra.mxu1 %vm311_vm10, %v310_v33 }
 0x1d3   :  { %298 = vmatprep.subr.mxu1 %v353_v23 }
 0x1d6   :  { %299 = vmatpush3.msra.mxu1 %v160_v26 }
 0x1d7   :  { %301 = vmatmul.mubr.msk.f32.vlgmr.msra.gmra.mrb[0].mxu1 %vm179_vm11, %v161_v34 }
 0x1df   :  { %v177_v35 = vpop.permute.xlu1 %176  ;;  %v72_v37 = vpop.permute.xlu0 %71 }
 0x1e0   :  { %v155_v41 = vadd.f32 %v293_v21, %v72_v37 }
 0x2aa   :  { %v249_v36 = vpop.f32.mrb[0].mxu1 }
 0x2ab   :  { %v250_v38 = vadd.f32 %v249_v36, %v177_v35  ;;  %v302_v39 = vpop.f32.mrb[1].mxu1 }
 0x2ad   :  { %vm253_vm12 = vcmp.ge.f32.partialorder %v250_v38, 0.0  ;;  %v254_v40 = vmul.f32 0.01, %v250_v38 }
 0x2af   :  { %v255_v42 = vsel %vm253_vm12, %v250_v38, %v254_v40 }
 0x2b0   :  { %v256_v43 = vadd.f32 %v255_v42, %v155_v41 }
 0x2b2   :  { %258 = vst.msk [vmem:[#allocation2] sm:$0xff] %vm257_vm13, %v256_v43 }
 0x2b3   :  { %334 = shalt.err (!%p331_p4)
}
 0x2b4   :  { %s335_s9 = scalar_lea.hbm %s449_s5, 128 }
 0x2b5   :  { %p336_p5 = scmp.ne.s32.totalorder %s449_s5, %s335_s9  ;;  %p339_p6 = scmp.lt.u32.totalorder %s335_s9, %s449_s5 }
 0x2b7   :  { %p341_p7 = pnand %p339_p6, %p336_p5 }
 0x2b9   :  { %344 = shalt.err (!%p341_p7)
}
 0x2ba   :  { %268 = dma.vmem_to_hbm [thread:$0]  %s266_s6, 128, %s449_s5, [#allocation3]  }
 0x2bb   :  { %345 = dma.done.wait [#allocation3], 128  }
 0x2bc   :  { %346 = vsyncadd [#allocation3], 4294967168 }
 0x2bd   :  { %272 = vsyncpa [#allocation3], 1 }

</bundles_post_ra>
